<compile_context>
chip_gen: v5e
topology: v5e:2x2
jax: 0.10.0
libtpu: 0.0.40
codegen_flags: <defaults>
</compile_context>

<pallas_src>
import functools

import jax
import jax.numpy as jnp
from jax.experimental import pallas as pl
from jax.experimental.pallas import tpu as pltpu


def _round_up(x, m):
    return ((x + m - 1) // m) * m


def _pick_divisor_tile(padded_dim, unit, cap):
    """Largest multiple of `unit` that divides `padded_dim` and is <= cap."""
    cap = max(unit, min(cap, padded_dim))
    best = unit
    t = unit
    while t <= cap:
        if padded_dim % t == 0:
            best = t
        t += unit
    return best


@functools.lru_cache(maxsize=1)
def _hw_config():
    """Generation-aware tile caps and VMEM limit."""
    vmem_bytes = 128 * 1024 * 1024
    try:
        vmem_bytes = int(pltpu.get_tpu_info().vmem_capacity_bytes)
    except Exception:
        pass
    if vmem_bytes >= 100 * 1024 * 1024:
        # v5e / v6e: 128 MiB physical VMEM per TensorCore -> fatter tiles.
        return dict(tm_max=512, tn_max=1024, tk_max=2048,
                    vmem_limit=96 * 1024 * 1024)
    # v7x: 64 MiB physical VMEM per TensorCore -> stay well under budget.
    return dict(tm_max=512, tn_max=512, tk_max=2048,
                vmem_limit=48 * 1024 * 1024)


def _linear_bias_kernel(x_ref, w_ref, b_ref, o_ref):
    """grid = (M blocks, N blocks, K blocks); the (tm, tn) f32 output tile is
    VMEM-resident across the K axis and accumulated into directly.

    x_ref: (tm, tk) activations (compute dtype, typically bf16)
    w_ref: (tk, tn) weight pre-transposed to (K, N) layout
    b_ref: (1,  tn) bias (f32), folded into the k == 0 init exactly once
    o_ref: (tm, tn) f32 output / accumulator (lane-dense: tn % 128 == 0)
    """
    @pl.when(pl.program_id(2) == 0)
    def _():
        o_ref[...] = jnp.zeros_like(o_ref) + b_ref[...]

    o_ref[...] += jnp.dot(x_ref[...], w_ref[...],
                          preferred_element_type=jnp.float32)


def _linear_nobias_kernel(x_ref, w_ref, o_ref):
    @pl.when(pl.program_id(2) == 0)
    def _():
        o_ref[...] = jnp.zeros_like(o_ref)

    o_ref[...] += jnp.dot(x_ref[...], w_ref[...],
                          preferred_element_type=jnp.float32)


def pack_linear_params(weight, bias=None, *, compute_dtype=jnp.bfloat16):
    """One-time parameter prep (do this when the layer is created):
    transpose the PyTorch (N, K) weight to (K, N), pad N/K to lane (128)
    multiples, and cast the matmul operand to the MXU compute dtype.
    The bias stays f32 (it is added post-accumulation)."""
    N, K = weight.shape
    Kp, Np = _round_up(K, 128), _round_up(N, 128)
    w_kn = jnp.asarray(weight).T.astype(compute_dtype)          # (K, N)
    if (Kp, Np) != (K, N):
        w_kn = jnp.pad(w_kn, ((0, Kp - K), (0, Np - N)))
    b = None
    if bias is not None:
        b = jnp.asarray(bias).astype(jnp.float32).reshape(1, N)
        if Np != N:
            b = jnp.pad(b, ((0, 0), (0, Np - N)))
    return dict(w_kn=w_kn, bias=b, n=N, k=K, compute_dtype=compute_dtype)


def pallas_linear(x, params, *, tm_max=None, tn_max=None, tk_max=None,
                  force_pallas=False):
    """y = x @ weight.T (+ bias), matching torch.nn.Linear.forward."""
    w_kn = params["w_kn"]
    bias = params["bias"]
    N, K = params["n"], params["k"]
    cd = params["compute_dtype"]

    orig_shape = x.shape
    assert orig_shape[-1] == K, "in_features mismatch"
    x2 = x.reshape(-1, K)
    M = x2.shape[0]

    # Tiny-layer fast path: pallas_call fixed overhead + (8,128) padding dwarf
    # the useful FLOPs, so let XLA fuse it (same bf16-operand / f32-acc math).
    if (not force_pallas) and (M * N * K < 128 * 128 * 128):
        y = jnp.dot(x2.astype(cd), w_kn[:K, :N],
                    preferred_element_type=jnp.float32)
        if bias is not None:
            y = y + bias[0, :N]
        return y.astype(jnp.float32).reshape(orig_shape[:-1] + (N,))

    cfg = _hw_config()
    tm_max = cfg["tm_max"] if tm_max is None else tm_max
    tn_max = cfg["tn_max"] if tn_max is None else tn_max
    tk_max = cfg["tk_max"] if tk_max is None else tk_max

    Kp, Np = w_kn.shape

    # N / K tiles must divide the pre-padded weight dims so the weight array
    # is never padded/copied per call. M tile just caps the activation tile.
    tn = _pick_divisor_tile(Np, 128, tn_max)
    tk = _pick_divisor_tile(Kp, 128, tk_max)
    tm = min(_round_up(max(M, 1), 8), tm_max)
    Mp = _round_up(M, tm)

    # Give both v7x TensorCores work: ensure >= 2 "parallel" output blocks
    # (harmless on single-TC v5e/v6e).
    if (Mp // tm) * (Np // tn) < 2:
        if Np >= 256:
            tn = _pick_divisor_tile(Np, 128, tn // 2)
        elif Mp >= 16:
            tm = max(8, _round_up(Mp // 2, 8))
            Mp = _round_up(M, tm)

    xp = x2.astype(cd)
    if (Mp, Kp) != (M, K):
        xp = jnp.pad(xp, ((0, Mp - M), (0, Kp - K)))

    grid = (Mp // tm, Np // tn, Kp // tk)

    # Honest cost estimate: x is re-streamed once per N block, W once per
    # M block, output written once.
    cd_bytes = jnp.dtype(cd).itemsize
    bytes_accessed = (grid[1] * Mp * Kp * cd_bytes
                      + grid[0] * Kp * Np * cd_bytes
                      + Mp * Np * 4
                      + (Np * 4 if bias is not None else 0))
    cost = pl.CostEstimate(flops=2 * Mp * Np * Kp, transcendentals=0,
                           bytes_accessed=int(bytes_accessed))

    x_spec = pl.BlockSpec((tm, tk), lambda i, j, k: (i, k))
    w_spec = pl.BlockSpec((tk, tn), lambda i, j, k: (k, j))
    o_spec = pl.BlockSpec((tm, tn), lambda i, j, k: (i, j))

    common = dict(
        out_shape=jax.ShapeDtypeStruct((Mp, Np), jnp.float32),
        compiler_params=pltpu.CompilerParams(
            dimension_semantics=("parallel", "parallel", "arbitrary"),
            vmem_limit_bytes=cfg["vmem_limit"]),
        cost_estimate=cost,
    )

    if bias is not None:
        b_spec = pl.BlockSpec((1, tn), lambda i, j, k: (0, j))
        out = pl.pallas_call(
            _linear_bias_kernel,
            grid_spec=pltpu.PrefetchScalarGridSpec(
                num_scalar_prefetch=0, grid=grid,
                in_specs=[x_spec, w_spec, b_spec], out_specs=o_spec),
            **common,
        )(xp, w_kn, bias)
    else:
        out = pl.pallas_call(
            _linear_nobias_kernel,
            grid_spec=pltpu.PrefetchScalarGridSpec(
                num_scalar_prefetch=0, grid=grid,
                in_specs=[x_spec, w_spec], out_specs=o_spec),
            **common,
        )(xp, w_kn)

    return out[:M, :N].reshape(orig_shape[:-1] + (N,))


def init_linear_params(key, in_features, out_features, use_bias=True):
    """Deterministic init mimicking nn.Linear.reset_parameters():
    U(-1/sqrt(in_features), 1/sqrt(in_features)) for weight and bias."""
    k_w, k_b = jax.random.split(key)
    bound = 1.0 / (in_features ** 0.5)
    weight = jax.random.uniform(
        k_w, (out_features, in_features), jnp.float32, -bound, bound)
    bias = (jax.random.uniform(k_b, (out_features,), jnp.float32, -bound, bound)
            if use_bias else None)
    return weight, bias


if __name__ == "__main__":
    key = jax.random.PRNGKey(0)
    k_x1, k_p1, k_x2, k_p2, k_x3 = jax.random.split(key, 5)

    # Test 1: convmed-sized layer (batch=8, in=32, out=16), forced through the
    # Pallas kernel (bf16 MXU operands, f32 accumulation, bias path).
    M, in_f, out_f = 8, 32, 16
    x = jax.random.normal(k_x1, (M, in_f), jnp.float32)
    w, b = init_linear_params(k_p1, in_f, out_f, use_bias=True)
    params = pack_linear_params(w, b)
    y = jax.block_until_ready(pallas_linear(x, params, force_pallas=True))
    y_ref = x @ w.T + b
    assert y.shape == (M, out_f)
    assert jnp.allclose(y, y_ref, atol=5e-2, rtol=5e-2), "mismatch (test 1)"

    # Test 2: non-divisible shapes + small tile caps so the full (M, N, K)
    # grid, K-axis accumulation, padding and lane-divisor tile picking are
    # exercised.
    M2, in2, out2 = 24, 320, 272
    x2 = jax.random.normal(k_x2, (M2, in2), jnp.float32)
    w2, b2 = init_linear_params(k_p2, in2, out2, use_bias=True)
    params2 = pack_linear_params(w2, b2)
    y2 = jax.block_until_ready(
        pallas_linear(x2, params2, tm_max=8, tn_max=128, tk_max=128,
                      force_pallas=True))
    y2_ref = x2 @ w2.T + b2
    assert y2.shape == (M2, out2)
    assert jnp.allclose(y2, y2_ref, atol=5e-2, rtol=5e-2), "mismatch (test 2)"

    # Test 3: exact-f32 compute path (original nn.Linear numerics) with a 3-D
    # activation (leading dims flattened), no bias; also hits the 2-block
    # split heuristic on M.
    x3 = jax.random.normal(k_x3, (2, 8, 32), jnp.float32)
    w3, _ = init_linear_params(k_p1, 32, 16, use_bias=False)
    params3 = pack_linear_params(w3, None, compute_dtype=jnp.float32)
    y3 = jax.block_until_ready(pallas_linear(x3, params3, force_pallas=True))
    assert y3.shape == (2, 8, 16)
    assert jnp.allclose(y3, jnp.einsum("bsk,nk->bsn", x3, w3),
                        atol=1e-4, rtol=1e-4), "mismatch (test 3)"

    # Test 4: tiny-layer fast path (no Pallas dispatch, same math).
    y4 = jax.block_until_ready(pallas_linear(x, params))
    assert jnp.allclose(y4, y_ref, atol=5e-2, rtol=5e-2), "mismatch (test 4)"

    # TODO(synk): the PyTorch forward's non-Tensor duck-typed branch
    # (`x.linear(weight, bias)`) has no Pallas equivalent.

    print("KERNEL_OK")
</pallas_src>

<mosaic_0001>
module attributes {stable_mosaic.version = 11 : i64} {
  func.func @_linear_bias_kernel(%arg0: i32, %arg1: i32, %arg2: i32, %arg3: memref<8x128xbf16, #tpu.memory_space<vmem>>, %arg4: memref<128x128xbf16, #tpu.memory_space<vmem>>, %arg5: memref<1x128xf32, #tpu.memory_space<vmem>>, %arg6: memref<8x128xf32, #tpu.memory_space<vmem>>) attributes {dimension_semantics = [#tpu.dimension_semantics<parallel>, #tpu.dimension_semantics<parallel>, #tpu.dimension_semantics<arbitrary>], iteration_bounds = array<i64: 1, 1, 1>, scalar_prefetch = 0 : i64, scratch_operands = 0 : i64, tpu.core_type = #tpu.core_type<tc>, window_params = [{transform_indices = @transform_0, window_bounds = array<i64: 8, 128>}, {transform_indices = @transform_1, window_bounds = array<i64: 128, 128>}, {transform_indices = @transform_2, window_bounds = array<i64: 1, 128>}, {transform_indices = @transform_3, window_bounds = array<i64: 8, 128>}]} {
    %c0_i32 = arith.constant 0 : i32
    %0 = arith.cmpi eq, %arg2, %c0_i32 : i32
    %1 = arith.extui %0 : i1 to i32
    %c0_i32_0 = arith.constant 0 : i32
    %2 = arith.cmpi ne, %1, %c0_i32_0 : i32
    scf.if %2 {
      %cst_8 = arith.constant 0.000000e+00 : f32
      %9 = vector.broadcast %cst_8 : f32 to vector<8x128xf32>
      %c0_9 = arith.constant 0 : index
      %c0_10 = arith.constant 0 : index
      %10 = vector.load %arg5[%c0_9, %c0_10] : memref<1x128xf32, #tpu.memory_space<vmem>>, vector<1x128xf32>
      %11 = vector.broadcast %10 : vector<1x128xf32> to vector<8x128xf32>
      %12 = arith.addf %9, %11 : vector<8x128xf32>
      %c0_11 = arith.constant 0 : index
      %c0_12 = arith.constant 0 : index
      %13 = vector.load %arg6[%c0_11, %c0_12] : memref<8x128xf32, #tpu.memory_space<vmem>>, vector<8x128xf32>
      tpu.vector_store %arg6[%c0_11, %c0_12], %12 {strides = array<i32>} : memref<8x128xf32, #tpu.memory_space<vmem>>, vector<8x128xf32>,
    } else {
    }
    %c0 = arith.constant 0 : index
    %c0_1 = arith.constant 0 : index
    %3 = vector.load %arg6[%c0, %c0_1] : memref<8x128xf32, #tpu.memory_space<vmem>>, vector<8x128xf32>
    %c0_2 = arith.constant 0 : index
    %c0_3 = arith.constant 0 : index
    %4 = vector.load %arg3[%c0_2, %c0_3] : memref<8x128xbf16, #tpu.memory_space<vmem>>, vector<8x128xbf16>
    %c0_4 = arith.constant 0 : index
    %c0_5 = arith.constant 0 : index
    %5 = vector.load %arg4[%c0_4, %c0_5] : memref<128x128xbf16, #tpu.memory_space<vmem>>, vector<128x128xbf16>
    %cst = arith.constant dense<0.000000e+00> : vector<8x128xf32>
    %6 = tpu.matmul %4, %5, %cst {dimension_numbers = #tpu.dot_dimension_numbers<[1], [0], [0], [1], [0, 0, 1, 1], [], []>} : vector<8x128xbf16>, vector<128x128xbf16>, vector<8x128xf32> -> vector<8x128xf32>
    %7 = arith.addf %3, %6 : vector<8x128xf32>
    %c0_6 = arith.constant 0 : index
    %c0_7 = arith.constant 0 : index
    %8 = vector.load %arg6[%c0_6, %c0_7] : memref<8x128xf32, #tpu.memory_space<vmem>>, vector<8x128xf32>
    tpu.vector_store %arg6[%c0_6, %c0_7], %7 {strides = array<i32>} : memref<8x128xf32, #tpu.memory_space<vmem>>, vector<8x128xf32>,
    return
  }
  func.func @transform_0(%arg0: i32, %arg1: i32, %arg2: i32) -> (i32, i32) {
    %c0_i32 = arith.constant 0 : i32
    return %arg0, %arg2 : i32, i32
  }
  func.func @transform_1(%arg0: i32, %arg1: i32, %arg2: i32) -> (i32, i32) {
    %c0_i32 = arith.constant 0 : i32
    return %arg2, %arg1 : i32, i32
  }
  func.func @transform_2(%arg0: i32, %arg1: i32, %arg2: i32) -> (i32, i32) {
    %c0_i32 = arith.constant 0 : i32
    %c0_i32_0 = arith.constant 0 : i32
    return %c0_i32, %arg1 : i32, i32
  }
  func.func @transform_3(%arg0: i32, %arg1: i32, %arg2: i32) -> (i32, i32) {
    %c0_i32 = arith.constant 0 : i32
    return %arg0, %arg1 : i32, i32
  }
}

</mosaic_0001>

<bundles_post_ra>
// kernel: tpu_custom_call.1
= control target key start
LH: loop header
LB: loop body
LE: loop exit
PB: predicated region body
PF: predicated region fallthrough
CT: control target
= control target key end

     0   :  { %8 = vsyncpa [#allocation3], 0  ;;  %s315_s0 = inlined_call_operand.hbm [shape: bf16[8,128], index: 0, kind: input, shape index: {}]   ;;  %s316_s1 = inlined_call_operand.hbm [shape: bf16[128,128], index: 1, kind: input, shape index: {}]   ;;  %s317_s2 = inlined_call_operand.vmem [shape: f32[1,128], index: 2, kind: input, shape index: {}]   ;;  %s318_s3 = inlined_call_operand.hbm [shape: f32[8,128], index: 3, kind: output, shape index: {}]  }
   0x1   :  { %9 = vsyncpa [#allocation6], 0 }
   0x2   :  { %10 = vsyncpa [#allocation4], 0  ;;  %s16_s14 = sshll.u32 %s315_s0, 4  ;;  %s278_s15 = smov [#allocation2]   ;;  %s17_s14 = int_to_ptr.hbm [resolvable:$true] %s16_s14 }
   0x3   :  { %s18_s16 = sshll.u32 %s278_s15, 4  ;;  %s26_s19 = sshll.u32 %s316_s1, 4  ;;  %s19_s16 = int_to_ptr.vmem [resolvable:$true] %s18_s16  ;;  %s27_s19 = int_to_ptr.hbm [resolvable:$true] %s26_s19 }
   0x4   :  { %21 = dma.hbm_to_vmem [thread:$0]  %s17_s14, 64, %s19_s16, [#allocation3]  }
   0x5   :  { %s279_s20 = smov [#allocation5]   ;;  %s280_s22 = smov 64  }
   0x6   :  { %s28_s21 = sshll.u32 %s279_s20, 4  ;;  %s281_s23 = smov 4   ;;  %s29_s21 = int_to_ptr.vmem [resolvable:$true] %s28_s21 }
   0x7   :  { %34 = dma.hbm_to_vmem [thread:$0]  %s27_s19, 1024, %s29_s21, [#allocation6], %s280_s22, %s280_s22, %s281_s23  }
   0x8   :  { %272 = dma.done.wait [#allocation3], 64  }
   0x9   :  { %273 = vsyncadd [#allocation3], 4294967232 }
   0xa   :  { %274 = dma.done.wait [#allocation6], 1024  }
   0xb   :  { %275 = vsyncadd [#allocation6], 4294966272  ;;  %v193_v0 = vld [vmem:[#allocation5 + $0x38] sm:$0xff]  ;;  %v192_v1 = vld [vmem:[#allocation5 + $0x30] sm:$0xff]  ;;  %s282_s24 = smov [#allocation7]   ;;  %s143_s28 = sshll.u32 %s318_s3, 4  ;;  %s144_s28 = int_to_ptr.hbm [resolvable:$true] %s143_s28 }
   0xc   :  { %121 = vmatpush.bf16.msra.mxu0 %v193_v0  ;;  %v191_v2 = vld [vmem:[#allocation5 + $0x28] sm:$0xff]  ;;  %v190_v3 = vld [vmem:[#allocation5 + $0x20] sm:$0xff]  ;;  %v189_v4 = vld [vmem:[#allocation5 + $0x18] sm:$0xff]  ;;  %s141_s25 = sshll.u32 %s282_s24, 4  ;;  %s142_s25 = int_to_ptr.vmem [resolvable:$true] %s141_s25 }
   0xd   :  { %v188_v5 = vld [vmem:[#allocation5 + $0x10] sm:$0xff]  ;;  %v187_v6 = vld [vmem:[#allocation5 + $0x8] sm:$0xff]  ;;  %v186_v7 = vld [vmem:[#allocation5] sm:$0xff] }
   0xe   :  { %v56_v8 = vld [vmem:[#allocation2] sm:$0xf] }
   0xf   :  { %v199_v9 = vld [vmem:[%s317_s2] ss:$0 sm:$0xff] }
  0x10   :  { %122 = vmatpush.bf16.msra.mxu0 %v192_v1 }
  0x14   :  { %123 = vmatpush.bf16.msra.mxu0 %v191_v2 }
  0x18   :  { %124 = vmatpush.bf16.msra.mxu0 %v190_v3 }
  0x1c   :  { %125 = vmatpush.bf16.msra.mxu0 %v189_v4 }
  0x20   :  { %126 = vmatpush.bf16.msra.mxu0 %v188_v5 }
  0x24   :  { %127 = vmatpush.bf16.msra.mxu0 %v187_v6 }
  0x28   :  { %128 = vmatpush.bf16.msra.mxu0 %v186_v7 }
  0x2b   :  { %129 = vmatmul.bf16.vlgmr.msra.gmra.mxu0 %v56_v8 }
  0xa8   :  { %v130_v10 = vpop.f32.mrf.mxu0 }
  0xa9   :  { %v134_v11 = vadd.f32 %v199_v9, %v130_v10 }
  0xab   :  { %135 = vst [vmem:[#allocation7] sm:$0xff] %v134_v11 }
  0xac   :  { %146 = dma.vmem_to_hbm [thread:$0]  %s142_s25, 128, %s144_s28, [#allocation4]  }
  0xb0   :  { %v132_v12 = vpop.f32.mrf.mxu0 }
  0xb1   :  { %276 = dma.done.wait [#allocation4], 128  }
  0xb2   :  { %277 = vsyncadd [#allocation4], 4294967168 }
  0xb3   :  { %151 = vsyncpa [#allocation3], 1 }
  0xb4   :  { %152 = vsyncpa [#allocation6], 1 }
  0xb5   :  { %153 = vsyncpa [#allocation4], 1 }

</bundles_post_ra>
